<compile_context>
chip_gen: v7x
topology: tpu7x:2x2x1
jax: 0.10.0
libtpu: 0.0.40
codegen_flags: <defaults>
</compile_context>

<pallas_src>
import functools

import jax
import jax.numpy as jnp
from jax import lax
from jax.experimental import pallas as pl
from jax.experimental.pallas import tpu as pltpu

# Exact f32 matmuls everywhere (kernel and reference) so results match tightly.
jax.config.update("jax_default_matmul_precision", "highest")

_VMEM_LIMIT_BYTES = 32 * 1024 * 1024  # explicit, fits v5e/v6e/v7x with headroom


# ---------------------------------------------------------------------------
# helpers
# ---------------------------------------------------------------------------
def _choose_bt(batch, row_bytes, *, target_bytes=3 << 20, cap=512):
    """Pick a batch tile: large enough to amortize the ~0.35us/step grid overhead,
    small enough that double-buffered in+out blocks stay well inside scoped VMEM."""
    bt = max(8, min(cap, int(target_bytes) // max(int(row_bytes), 1)))
    bt = 1 << (int(bt).bit_length() - 1)          # round down to a power of two (>=8)
    if batch <= bt:
        return int(batch)                         # single grid step, no padding
    return int(bt)


def _pad_batch(F, bt):
    """Zero-pad the batch up to a multiple of the tile (instead of shrinking the tile)."""
    B = F.shape[0]
    Bp = ((B + bt - 1) // bt) * bt
    if Bp != B:
        F = jnp.pad(F, ((0, Bp - B),) + ((0, 0),) * (F.ndim - 1))
    return F, Bp


def _const_spec(arr):
    """Full-block BlockSpec with a constant index map (broadcast parameter)."""
    nd = arr.ndim
    return pl.BlockSpec(arr.shape, lambda b, _nd=nd: (0,) * _nd)


def _compiler_params():
    return pltpu.CompilerParams(
        dimension_semantics=("parallel",),        # shard batch steps across TCs on v7x
        vmem_limit_bytes=_VMEM_LIMIT_BYTES,
    )


def _mm(a, b, contract_a, contract_b):
    """lax.dot_general with a single contraction, f32 accumulation."""
    return lax.dot_general(
        a, b, (((contract_a,), (contract_b,)), ((), ())),
        preferred_element_type=jnp.float32)


# ---------------------------------------------------------------------------
# kernels
# ---------------------------------------------------------------------------
def _sam2a_kernel(f_ref, wbig_ref, r2_ref, m2_ref, out_ref):
    # f:(bt,N,D)  wbig:(N*N, N*D)  r2,m2:(N, N*N)  out:(bt, N, N*D) lane-dense
    f = f_ref[...].astype(jnp.float32)
    s = jnp.einsum("bnd,bmd->bnm", f, f, preferred_element_type=jnp.float32)
    r2 = r2_ref[...].astype(jnp.float32)
    m2 = m2_ref[...].astype(jnp.float32)
    stile = _mm(s, r2, 2, 0)                      # (bt,N,N*N): S tiled along lanes (MXU)
    sexp = stile * m2[None]                       # block-diagonal placement of S rows
    out = _mm(sexp, wbig_ref[...].astype(jnp.float32), 2, 0)   # (bt,N,N*D), pure MXU
    out_ref[...] = out.astype(out_ref.dtype)


def _sam2e_kernel(f_ref, r_ref, bmask_ref, out_ref):
    # f:(bt,N,D)  r:(D, N*D)  bmask:(N, N*D)  out:(bt, N, N*D) lane-dense
    f = f_ref[...].astype(jnp.float32)
    s = jnp.einsum("bnd,bmd->bnm", f, f, preferred_element_type=jnp.float32)
    r = r_ref[...].astype(jnp.float32)
    bmask = bmask_ref[...].astype(jnp.float32)
    tiled_f = _mm(f, r, 2, 0)                     # tiled_f[b,n,m*D+d] = F[b,n,d]   (MXU)
    g = tiled_f * bmask[None]                     # block-diagonal expansion of F
    q = jnp.einsum("bnm,bmp->bnp", s, g,
                   preferred_element_type=jnp.float32)   # q[b,n,m*D+d] = S*F[b,m,d]
    out_ref[...] = (tiled_f * q).astype(out_ref.dtype)   # = S * U, flattened layout


def _sam3_kernel(*refs, interaction, use_residual, num_layers, pooled):
    # ref order: f, Kstack(L,D,D), [Qstack(L,D,D)], [Wflat(L,N*N,D), r2(N,N*N), m2(N,N*N)],
    #            [poolw(N,1)], out
    idx = 0
    f_ref = refs[idx]; idx += 1
    k_ref = refs[idx]; idx += 1
    q_ref = None
    if use_residual:
        q_ref = refs[idx]; idx += 1
    if interaction == "SAM3A":
        w_ref = refs[idx]; r2_ref = refs[idx + 1]; m2_ref = refs[idx + 2]; idx += 3
    pw_ref = None
    if pooled:
        pw_ref = refs[idx]; idx += 1
    out_ref = refs[idx]

    f = f_ref[...].astype(jnp.float32)            # (bt, N, D)
    if interaction == "SAM3A":                    # hoist constants out of the layer loop
        r2 = r2_ref[...].astype(jnp.float32)
        m2 = m2_ref[...].astype(jnp.float32)

    for l in range(num_layers):                   # fused layers: F stays in VMEM/vregs
        kw = k_ref[l].astype(jnp.float32)         # (D, D)
        kf = _mm(f, kw, 2, 1)                     # K(F) = F @ Kw^T
        s = jnp.einsum("bnd,bmd->bnm", f, kf, preferred_element_type=jnp.float32)
        if interaction == "SAM3A":
            stile = _mm(s, r2, 2, 0)              # (bt, N, N*N)
            sexp = stile * m2[None]
            out = _mm(sexp, w_ref[l].astype(jnp.float32), 2, 0)   # sum_m S*W via MXU
        else:  # SAM3E: (S.unsqueeze(-1)*U).sum(2) == F * (S @ F)
            sf = jnp.einsum("bnm,bmd->bnd", s, f, preferred_element_type=jnp.float32)
            out = f * sf
        if use_residual:
            qw = q_ref[l].astype(jnp.float32)
            out = out + _mm(f, qw, 2, 1)
        f = out

    if pooled:                                    # fused weighted/mean/sum pooling
        pw = pw_ref[...].astype(jnp.float32)      # (N, 1)
        out_ref[...] = jnp.sum(f * pw[None, :, :], axis=1).astype(out_ref.dtype)
    else:
        out_ref[...] = f.astype(out_ref.dtype)


# ---------------------------------------------------------------------------
# pallas_call wrappers
# ---------------------------------------------------------------------------
@functools.partial(jax.jit, static_argnames=("bt",))
def sam2a_forward(F, wbig, r2, m2, *, bt):
    B, N, D = F.shape
    Fp, Bp = _pad_batch(F, bt)
    out = pl.pallas_call(
        _sam2a_kernel,
        out_shape=jax.ShapeDtypeStruct((Bp, N, N * D), F.dtype),
        grid=(Bp // bt,),
        in_specs=[pl.BlockSpec((bt, N, D), lambda b: (b, 0, 0)),
                  _const_spec(wbig), _const_spec(r2), _const_spec(m2)],
        out_specs=pl.BlockSpec((bt, N, N * D), lambda b: (b, 0, 0)),
        compiler_params=_compiler_params(),
    )(Fp, wbig, r2, m2)
    return out[:B]


@functools.partial(jax.jit, static_argnames=("bt",))
def sam2e_forward(F, r, bmask, *, bt):
    B, N, D = F.shape
    Fp, Bp = _pad_batch(F, bt)
    out = pl.pallas_call(
        _sam2e_kernel,
        out_shape=jax.ShapeDtypeStruct((Bp, N, N * D), F.dtype),
        grid=(Bp // bt,),
        in_specs=[pl.BlockSpec((bt, N, D), lambda b: (b, 0, 0)),
                  _const_spec(r), _const_spec(bmask)],
        out_specs=pl.BlockSpec((bt, N, N * D), lambda b: (b, 0, 0)),
        compiler_params=_compiler_params(),
    )(Fp, r, bmask)
    return out[:B]


@functools.partial(jax.jit,
                   static_argnames=("interaction", "use_residual", "pooled", "bt"))
def sam3_forward(F, kstack, qstack, wflat, r2, m2, poolw, *,
                 interaction, use_residual, pooled, bt):
    B, N, D = F.shape
    L = kstack.shape[0]
    Fp, Bp = _pad_batch(F, bt)

    operands = [Fp, kstack]
    in_specs = [pl.BlockSpec((bt, N, D), lambda b: (b, 0, 0)), _const_spec(kstack)]
    if use_residual:
        operands.append(qstack); in_specs.append(_const_spec(qstack))
    if interaction == "SAM3A":
        operands += [wflat, r2, m2]
        in_specs += [_const_spec(wflat), _const_spec(r2), _const_spec(m2)]
    if pooled:
        operands.append(poolw); in_specs.append(_const_spec(poolw))

    if pooled:
        out_shape = jax.ShapeDtypeStruct((Bp, D), F.dtype)
        out_spec = pl.BlockSpec((bt, D), lambda b: (b, 0))
    else:
        out_shape = jax.ShapeDtypeStruct((Bp, N, D), F.dtype)
        out_spec = pl.BlockSpec((bt, N, D), lambda b: (b, 0, 0))

    kern = functools.partial(_sam3_kernel, interaction=interaction,
                             use_residual=use_residual, num_layers=L, pooled=pooled)
    out = pl.pallas_call(
        kern, out_shape=out_shape, grid=(Bp // bt,),
        in_specs=in_specs, out_specs=out_spec,
        compiler_params=_compiler_params(),
    )(*operands)
    return out[:B]


# ---------------------------------------------------------------------------
# SAMBlock module (JAX/Pallas port)
# ---------------------------------------------------------------------------
class SAMBlockJAX:
    def __init__(self, num_layers, num_fields, embedding_dim, use_residual=False,
                 interaction_type="SAM2E", aggregation="concat", dropout=0,
                 *, key, batch_tile=None):
        assert aggregation in ("concat", "weighted_pooling", "mean_pooling", "sum_pooling")
        self.num_fields = num_fields
        self.embedding_dim = embedding_dim
        self.use_residual = use_residual
        self.interaction_type = interaction_type
        self.aggregation = aggregation
        self.batch_tile = batch_tile
        # TODO(synk): dropout p>0 (training mode) is not implemented; identity here.

        N, D = num_fields, embedding_dim
        if aggregation == "weighted_pooling":
            self.agg_weight = jnp.ones((N, 1), jnp.float32)

        # --- constant expansion/mask matrices for lane-dense MXU formulations ---
        if interaction_type in ("SAM2A", "SAM3A"):
            q_idx = jnp.arange(N * N)
            self.R2 = (q_idx[None, :] % N == jnp.arange(N)[:, None]).astype(jnp.float32)
            self.M2 = (q_idx[None, :] // N == jnp.arange(N)[:, None]).astype(jnp.float32)
        if interaction_type == "SAM2E":
            p_idx = jnp.arange(N * D)
            self.R = (p_idx[None, :] % D == jnp.arange(D)[:, None]).astype(jnp.float32)
            self.BMASK = (p_idx[None, :] // D == jnp.arange(N)[:, None]).astype(jnp.float32)

        xavier_std = (2.0 / (D + D)) ** 0.5
        self.layers = []            # raw per-layer params (also used by the reference)
        if interaction_type == "SAM2A":
            assert aggregation == "concat", "Only aggregation=concat is supported for SAM2A."
            W = jnp.ones((N, N, D), jnp.float32)
            self.layers.append({"W": W})
            eye_m = jnp.eye(N, dtype=jnp.float32)
            # Wbig[n*N+m, m'*D+d] = delta(m, m') * W[n, m, d]   (precomputed in plain JAX)
            self.Wbig = (W[:, :, None, :] * eye_m[None, :, :, None]).reshape(N * N, N * D)
        elif interaction_type == "SAM2E":
            assert aggregation == "concat", "Only aggregation=concat is supported for SAM2E."
            self.layers.append({})
        elif interaction_type in ("SAM3A", "SAM3E"):
            ks, qs, ws = [], [], []
            for _ in range(num_layers):
                key, k1, k2 = jax.random.split(key, 3)
                params = {"K": jax.random.normal(k1, (D, D), jnp.float32) * xavier_std}
                if use_residual:
                    params["Q"] = jax.random.normal(k2, (D, D), jnp.float32) * xavier_std
                    qs.append(params["Q"])
                if interaction_type == "SAM3A":
                    params["W"] = jnp.ones((N, N, D), jnp.float32)
                    ws.append(params["W"].reshape(N * N, D))
                ks.append(params["K"])
                self.layers.append(params)
            self.Kstack = jnp.stack(ks)                           # (L, D, D)
            self.Qstack = jnp.stack(qs) if use_residual else None
            self.WflatStack = jnp.stack(ws) if interaction_type == "SAM3A" else None
        else:
            raise ValueError(f"interaction_type={interaction_type} not supported.")

    def __call__(self, F):
        F = F.astype(jnp.float32)
        B, N, D = F.shape
        it = self.interaction_type

        if it in ("SAM2A", "SAM2E"):
            # write-bound: budget tiles against in-row (N*D) + out-row (N*N*D) f32 bytes
            row_bytes = (N * D + N * N * D) * 4
            bt = self.batch_tile or _choose_bt(B, row_bytes, cap=512)
            if it == "SAM2A":
                out = sam2a_forward(F, self.Wbig, self.R2, self.M2, bt=bt)
            else:
                out = sam2e_forward(F, self.R, self.BMASK, bt=bt)
            return out.reshape(B, N * N * D)      # 'concat': free contiguous reshape

        # SAM3A / SAM3E (fused layers + fused pooling)
        pooled = self.aggregation != "concat"
        poolw = None
        if pooled:
            if self.aggregation == "weighted_pooling":
                poolw = self.agg_weight
            elif self.aggregation == "mean_pooling":
                poolw = jnp.full((N, 1), 1.0 / N, jnp.float32)
            else:  # sum_pooling
                poolw = jnp.ones((N, 1), jnp.float32)
        # rough per-row working set: f, kf, out, residual, s, stile/sexp
        row_bytes = 4 * (4 * N * D + N * N + 2 * N * N * N)
        bt = self.batch_tile or _choose_bt(B, row_bytes, cap=1024)
        out = sam3_forward(
            F, self.Kstack, self.Qstack, self.WflatStack,
            self.R2 if it == "SAM3A" else None,
            self.M2 if it == "SAM3A" else None,
            poolw,
            interaction=it, use_residual=self.use_residual, pooled=pooled, bt=bt)
        if pooled:
            return out
        return out.reshape(B, N * D)              # 'concat': free contiguous reshape


# ---------------------------------------------------------------------------
# pure-JAX reference (mirrors the PyTorch module literally)
# ---------------------------------------------------------------------------
def _reference_forward(block, F):
    F = F.astype(jnp.float32)
    it = block.interaction_type
    for p in block.layers:
        if it == "SAM2A":
            S = jnp.einsum("bnd,bmd->bnm", F, F)
            F = S[..., None] * p["W"][None]
        elif it == "SAM2E":
            S = jnp.einsum("bnd,bmd->bnm", F, F)
            U = jnp.einsum("bnd,bmd->bnmd", F, F)
            F = S[..., None] * U
        elif it == "SAM3A":
            KF = F @ p["K"].T
            S = jnp.einsum("bnd,bmd->bnm", F, KF)
            out = jnp.sum(S[..., None] * p["W"][None], axis=2)
            if block.use_residual:
                out = out + F @ p["Q"].T
            F = out
        else:  # SAM3E
            KF = F @ p["K"].T
            S = jnp.einsum("bnd,bmd->bnm", F, KF)
            U = jnp.einsum("bnd,bmd->bnmd", F, F)
            out = jnp.sum(S[..., None] * U, axis=2)
            if block.use_residual:
                out = out + F @ p["Q"].T
            F = out

    if block.aggregation == "concat":
        return F.reshape(F.shape[0], -1)
    if block.aggregation == "weighted_pooling":
        return jnp.sum(F * block.agg_weight[None], axis=1)
    if block.aggregation == "mean_pooling":
        return jnp.mean(F, axis=1)
    return jnp.sum(F, axis=1)


# ---------------------------------------------------------------------------
if __name__ == "__main__":
    key = jax.random.PRNGKey(0)
    N, D = 8, 32  # num_fields, embedding_dim

    configs = [
        dict(B=2, num_layers=1, interaction_type="SAM2E", aggregation="concat", use_residual=False),
        dict(B=2, num_layers=1, interaction_type="SAM2A", aggregation="concat", use_residual=False),
        dict(B=2, num_layers=2, interaction_type="SAM3A", aggregation="mean_pooling", use_residual=True),
        dict(B=2, num_layers=1, interaction_type="SAM3A", aggregation="concat", use_residual=False),
        dict(B=2, num_layers=2, interaction_type="SAM3E", aggregation="weighted_pooling", use_residual=True),
        dict(B=2, num_layers=2, interaction_type="SAM3E", aggregation="sum_pooling", use_residual=False),
        # exercise the batch-tiling + zero-padding path (B not a multiple of the tile)
        dict(B=20, num_layers=2, interaction_type="SAM3E", aggregation="mean_pooling",
             use_residual=True, batch_tile=8),
        dict(B=20, num_layers=1, interaction_type="SAM2E", aggregation="concat",
             use_residual=False, batch_tile=8),
    ]

    for cfg in configs:
        cfg = dict(cfg)
        B = cfg.pop("B")
        batch_tile = cfg.pop("batch_tile", None)
        key, ik, fk = jax.random.split(key, 3)
        F_in = jax.random.normal(fk, (B, N, D), jnp.float32) * 0.5

        block = SAMBlockJAX(num_fields=N, embedding_dim=D, key=ik,
                            batch_tile=batch_tile, **cfg)
        out = jax.block_until_ready(block(F_in))
        ref = _reference_forward(block, F_in)
        assert out.shape == ref.shape, (cfg, out.shape, ref.shape)
        assert jnp.allclose(out, ref, rtol=1e-3, atol=1e-3), (
            cfg, float(jnp.max(jnp.abs(out - ref))))

    print("KERNEL_OK")
</pallas_src>

<mosaic_0001>
module attributes {stable_mosaic.version = 11 : i64} {
  func.func @_sam2e_kernel(%arg0: i32, %arg1: memref<2x8x32xf32, #tpu.memory_space<vmem>>, %arg2: memref<32x256xf32, #tpu.memory_space<vmem>>, %arg3: memref<8x256xf32, #tpu.memory_space<vmem>>, %arg4: memref<2x8x256xf32, #tpu.memory_space<vmem>>) attributes {dimension_semantics = [#tpu.dimension_semantics<parallel>], iteration_bounds = array<i64: 1>, scalar_prefetch = 0 : i64, scratch_operands = 0 : i64, tpu.core_type = #tpu.core_type<tc>, window_params = [{transform_indices = @transform_0, window_bounds = array<i64: 2, 8, 32>}, {pipeline_mode = #tpu.pipeline_mode<synchronous>, transform_indices = @transform_1, window_bounds = array<i64: 32, 256>}, {pipeline_mode = #tpu.pipeline_mode<synchronous>, transform_indices = @transform_2, window_bounds = array<i64: 8, 256>}, {transform_indices = @transform_3, window_bounds = array<i64: 2, 8, 256>}]} {
    %c0 = arith.constant 0 : index
    %c0_0 = arith.constant 0 : index
    %c0_1 = arith.constant 0 : index
    %0 = vector.load %arg1[%c0, %c0_0, %c0_1] : memref<2x8x32xf32, #tpu.memory_space<vmem>>, vector<2x8x32xf32>
    "tpu.trace_start"() <{level = 10 : i32, message = "bnd,bmd->bnm"}> : () -> ()
    %cst = arith.constant dense<0.000000e+00> : vector<2x8x8xf32>
    %1 = tpu.matmul %0, %0, %cst {dimension_numbers = #tpu.dot_dimension_numbers<[2], [2], [1], [1], [0, 0, 0, 1, 1, 1], [0], [0]>, precision = #tpu.contract_precision<fp32>} : vector<2x8x32xf32>, vector<2x8x32xf32>, vector<2x8x8xf32> -> vector<2x8x8xf32>
    "tpu.trace_stop"() : () -> ()
    %c0_2 = arith.constant 0 : index
    %c0_3 = arith.constant 0 : index
    %2 = vector.load %arg2[%c0_2, %c0_3] : memref<32x256xf32, #tpu.memory_space<vmem>>, vector<32x256xf32>
    %c0_4 = arith.constant 0 : index
    %c0_5 = arith.constant 0 : index
    %3 = vector.load %arg3[%c0_4, %c0_5] : memref<8x256xf32, #tpu.memory_space<vmem>>, vector<8x256xf32>
    %cst_6 = arith.constant dense<0.000000e+00> : vector<2x8x256xf32>
    %4 = tpu.matmul %0, %2, %cst_6 {dimension_numbers = #tpu.dot_dimension_numbers<[2], [0], [0, 1], [1], [0, 0, 0, 1, 1, 1], [], []>, precision = #tpu.contract_precision<fp32>} : vector<2x8x32xf32>, vector<32x256xf32>, vector<2x8x256xf32> -> vector<2x8x256xf32>
    %5 = vector.shape_cast %3 : vector<8x256xf32> to vector<1x8x256xf32>
    %6 = vector.broadcast %5 : vector<1x8x256xf32> to vector<2x8x256xf32>
    %7 = arith.mulf %4, %6 : vector<2x8x256xf32>
    "tpu.trace_start"() <{level = 10 : i32, message = "bnm,bmp->bnp"}> : () -> ()
    %cst_7 = arith.constant dense<0.000000e+00> : vector<2x8x256xf32>
    %8 = tpu.matmul %1, %7, %cst_7 {dimension_numbers = #tpu.dot_dimension_numbers<[2], [1], [1], [2], [0, 0, 0, 1, 1, 2], [0], [0]>, precision = #tpu.contract_precision<fp32>} : vector<2x8x8xf32>, vector<2x8x256xf32>, vector<2x8x256xf32> -> vector<2x8x256xf32>
    "tpu.trace_stop"() : () -> ()
    %9 = arith.mulf %4, %8 : vector<2x8x256xf32>
    %c0_8 = arith.constant 0 : index
    %c0_9 = arith.constant 0 : index
    %c0_10 = arith.constant 0 : index
    %10 = vector.load %arg4[%c0_8, %c0_9, %c0_10] : memref<2x8x256xf32, #tpu.memory_space<vmem>>, vector<2x8x256xf32>
    tpu.vector_store %arg4[%c0_8, %c0_9, %c0_10], %9 {strides = array<i32>} : memref<2x8x256xf32, #tpu.memory_space<vmem>>, vector<2x8x256xf32>,
    return
  }
  func.func @transform_0(%arg0: i32) -> (i32, i32, i32) {
    %c0_i32 = arith.constant 0 : i32
    %c0_i32_0 = arith.constant 0 : i32
    %c0_i32_1 = arith.constant 0 : i32
    return %arg0, %c0_i32, %c0_i32_0 : i32, i32, i32
  }
  func.func @transform_1(%arg0: i32) -> (i32, i32) {
    %c0_i32 = arith.constant 0 : i32
    %c0_i32_0 = arith.constant 0 : i32
    %c0_i32_1 = arith.constant 0 : i32
    return %c0_i32, %c0_i32_0 : i32, i32
  }
  func.func @transform_2(%arg0: i32) -> (i32, i32) {
    %c0_i32 = arith.constant 0 : i32
    %c0_i32_0 = arith.constant 0 : i32
    %c0_i32_1 = arith.constant 0 : i32
    return %c0_i32, %c0_i32_0 : i32, i32
  }
  func.func @transform_3(%arg0: i32) -> (i32, i32, i32) {
    %c0_i32 = arith.constant 0 : i32
    %c0_i32_0 = arith.constant 0 : i32
    %c0_i32_1 = arith.constant 0 : i32
    return %arg0, %c0_i32, %c0_i32_0 : i32, i32, i32
  }
}

</mosaic_0001>

<bundles_post_ra>
// kernel: sam2e_forward.1
= control target key start
LH: loop header
LB: loop body
LE: loop exit
PB: predicated region body
PF: predicated region fallthrough
CT: control target
= control target key end

     0   :  { %8 = vsyncpa [#allocation3], 0  ;;  %s3134_s0 = inlined_call_operand.hbm [shape: f32[2,8,32], index: 0, kind: input, shape index: {}]   ;;  %s3135_s1 = inlined_call_operand.hbm [shape: f32[32,256], index: 1, kind: input, shape index: {}]   ;;  %s3136_s2 = inlined_call_operand.hbm [shape: f32[8,256], index: 2, kind: input, shape index: {}]   ;;  %s3137_s3 = inlined_call_operand.hbm [shape: f32[2,8,256], index: 3, kind: output, shape index: {}]  }
   0x1   :  { %9 = vsyncpa [#allocation6], 0 }
   0x2   :  { %10 = vsyncpa [#allocation4], 0  ;;  %s2820_s12 = smov [#allocation5]   ;;  %s2726_s16 = scalar_lea.hbm %s3135_s1, 1024 }
   0x3   :  { %s28_s13 = sshll.u32 %s2820_s12, 4  ;;  %p2727_p0 = scmp.ne.s32.totalorder %s3135_s1, %s2726_s16  ;;  %s29_s13 = int_to_ptr.vmem [resolvable:$true] %s28_s13 }
   0x4   :  { %p2730_p1 = scmp.lt.u32.totalorder %s2726_s16, %s3135_s1 }
   0x6   :  { %p2732_p2 = pnand %p2730_p1, %p2727_p0 }
   0x8   :  { %2735 = shalt.err (!%p2732_p2)
}
   0x9   :  { %s2736_s21 = scalar_lea.vmem %s29_s13, 1024  ;;  %p2741_p4 = scmp.lt.s32.totalorder %s29_s13, %s29_s13 }
   0xa   :  { %p2737_p3 = scmp.ne.s32.totalorder %s29_s13, %s2736_s21  ;;  %p2742_p5 = scmp.lt.s32.totalorder %s2736_s21, %s2736_s21 }
   0xc   :  { %p2743_p6 = por %p2742_p5, %p2741_p4 }
   0xe   :  { %p2744_p7 = pnand %p2743_p6, %p2737_p3 }
  0x10   :  { %2747 = shalt.err (!%p2744_p7)
}
  0x11   :  { %s2821_s22 = smov 256   ;;  %s2822_s23 = smov 16  }
  0x12   :  { %34 = dma.hbm_to_vmem [thread:$0]  %s3135_s1, 1024, %s29_s13, [#allocation6], %s2821_s22, %s2821_s22, %s2822_s23  }
  0x13   :  { %s2823_s26 = smov [#allocation2]   ;;  %s2748_s30 = scalar_lea.hbm %s3134_s0, 256 }
  0x14   :  { %s16_s27 = sshll.u32 %s2823_s26, 4  ;;  %p2749_p8 = scmp.ne.s32.totalorder %s3134_s0, %s2748_s30  ;;  %s17_s27 = int_to_ptr.vmem [resolvable:$true] %s16_s27 }
  0x15   :  { %p2752_p9 = scmp.lt.u32.totalorder %s2748_s30, %s3134_s0 }
  0x17   :  { %p2754_p10 = pnand %p2752_p9, %p2749_p8 }
  0x19   :  { %2757 = shalt.err (!%p2754_p10)
}
  0x1a   :  { %s2758_s8 = scalar_lea.vmem %s17_s27, 256  ;;  %p2763_p12 = scmp.lt.s32.totalorder %s17_s27, %s17_s27 }
  0x1b   :  { %p2759_p11 = scmp.ne.s32.totalorder %s17_s27, %s2758_s8  ;;  %p2764_p13 = scmp.lt.s32.totalorder %s2758_s8, %s2758_s8 }
  0x1d   :  { %p2765_p0 = por %p2764_p13, %p2763_p12 }
  0x1f   :  { %p2766_p1 = pnand %p2765_p0, %p2759_p11 }
  0x21   :  { %2769 = shalt.err (!%p2766_p1)
}
  0x22   :  { %s2824_s1 = smov 128   ;;  %s2825_s9 = smov 8  }
  0x23   :  { %22 = dma.hbm_to_vmem [thread:$0]  %s3134_s0, 256, %s17_s27, [#allocation3], %s2824_s1, %s2824_s1, %s2825_s9  }
  0x24   :  { %s2826_s12 = smov [#allocation7]   ;;  %s2770_s16 = scalar_lea.hbm %s3136_s2, 256 }
  0x25   :  { %s41_s13 = sshll.u32 %s2826_s12, 4  ;;  %p2771_p2 = scmp.ne.s32.totalorder %s3136_s2, %s2770_s16  ;;  %s42_s13 = int_to_ptr.vmem [resolvable:$true] %s41_s13 }
  0x26   :  { %p2774_p3 = scmp.lt.u32.totalorder %s2770_s16, %s3136_s2 }
  0x28   :  { %p2776_p4 = pnand %p2774_p3, %p2771_p2 }
  0x2a   :  { %2779 = shalt.err (!%p2776_p4)
}
  0x2b   :  { %s2780_s21 = scalar_lea.vmem %s42_s13, 256  ;;  %p2785_p6 = scmp.lt.s32.totalorder %s42_s13, %s42_s13 }
  0x2c   :  { %p2781_p5 = scmp.ne.s32.totalorder %s42_s13, %s2780_s21  ;;  %p2786_p7 = scmp.lt.s32.totalorder %s2780_s21, %s2780_s21 }
  0x2e   :  { %p2787_p8 = por %p2786_p7, %p2785_p6 }
  0x30   :  { %p2788_p9 = pnand %p2787_p8, %p2781_p5 }
  0x32   :  { %2791 = shalt.err (!%p2788_p9)
}
  0x33   :  { %44 = dma.hbm_to_vmem [thread:$0]  %s3136_s2, 256, %s42_s13, [#allocation6]  }
  0x34   :  { %2814 = dma.done.wait [#allocation3], 256  }
  0x35   :  { %2815 = vsyncadd [#allocation3], 4294967040 }
  0x36   :  { %2816 = dma.done.wait [#allocation6], 1280  }
  0x37   :  { %2817 = vsyncadd [#allocation6], 4294966016  ;;  %v2827_v0 = vmov 0.0   ;;  %vm2828_vm0 = vmmov 0   ;;  %vm56_vm1 = vcmask 261120   ;;  %v54_v1 = vld [vmem:[#allocation2] sm:$0xff] }
  0x38   :  { %2548 = vmatprep.subr.mxu0 %v2827_v0  ;;  %2550 = vmatprep.mubr.msk.f32.mxu0 %vm2828_vm0, %v2827_v0  ;;  %v58_v2 = vsel %vm56_vm1, %v54_v1, 0  ;;  %v55_v4 = vld [vmem:[#allocation2 + $0x8] sm:$0xff]  ;;  %v956_v15 = vld [vmem:[#allocation5 + $0x8] sm:$0xff]  ;;  %v955_v19 = vld [vmem:[#allocation5] sm:$0xff]  ;;  %vm1561_vm2 = vcmask 64512   ;;  %s2829_s2 = smov [#allocation8]  }
  0x39   :  { %2578 = vmatprep.subr.mxu1 %v2827_v0  ;;  %2580 = vmatprep.mubr.msk.f32.mxu1 %vm2828_vm0, %v2827_v0  ;;  %v2895_v3 = vand.u32 4294901760, %v58_v2  ;;  %v507_v7 = vsel %vm56_vm1, %v55_v4, 0  ;;  %v958_v16 = vld [vmem:[#allocation5 + $0x18] sm:$0xff]  ;;  %v965_v17 = vand.u32 4294901760, %v956_v15  ;;  %v957_v20 = vld [vmem:[#allocation5 + $0x10] sm:$0xff]  ;;  %v960_v21 = vld [vmem:[#allocation5 + $0x28] sm:$0xff] }
  0x3a   :  { %v2905_v8 = vand.u32 4294901760, %v507_v7  ;;  %v969_v18 = vand.u32 4294901760, %v958_v16  ;;  %v962_v22 = vld [vmem:[#allocation5 + $0x38] sm:$0xff]  ;;  %v967_v23 = vand.u32 4294901760, %v955_v19  ;;  %v971_v24 = vand.u32 4294901760, %v957_v20  ;;  %v959_v29 = vld [vmem:[#allocation5 + $0x20] sm:$0xff] }
  0x3b   :  { %2549 = vmatpush3.xpose.msra.mxu0 %v2895_v3  ;;  %v2899_v5 = vsub.f32 %v58_v2, %v2895_v3  ;;  %v2958_v25 = vsub.f32 %v956_v15, %v965_v17  ;;  %v973_v27 = vand.u32 4294901760, %v960_v21  ;;  %v977_v28 = vand.u32 4294901760, %v962_v22  ;;  %v961_v30 = vld [vmem:[#allocation5 + $0x30] sm:$0xff]  ;;  %s2511_s25 = sshll.u32 %s2829_s2, 4  ;;  %s2512_s25 = int_to_ptr.vmem [resolvable:$true] %s2511_s25 }
  0x3c   :  { %2553 = vmatprep.subr.mxu0 %v2827_v0  ;;  %2579 = vmatpush3.xpose.msra.mxu1 %v2905_v8  ;;  %v2911_v10 = vsub.f32 %v507_v7, %v2905_v8  ;;  %v2960_v26 = vsub.f32 %v958_v16, %v969_v18  ;;  %v2962_v31 = vpack.c.bf16 %v969_v18, %v965_v17  ;;  %v975_v34 = vand.u32 4294901760, %v959_v29  ;;  %s2792_s26 = scalar_lea.vmem %s2512_s25, 512  ;;  %p2797_p11 = scmp.lt.s32.totalorder %s2512_s25, %s2512_s25 }
  0x3d   :  { %v2903_v6 = vand.u32 4294901760, %v2899_v5  ;;  %2583 = vmatprep.subr.mxu1 %v2827_v0  ;;  %v2964_v32 = vsub.f32 %v955_v19, %v967_v23  ;;  %v2966_v33 = vsub.f32 %v957_v20, %v971_v24  ;;  %v979_v35 = vand.u32 4294901760, %v961_v30  ;;  %p2793_p10 = scmp.ne.s32.totalorder %s2512_s25, %s2792_s26  ;;  %p2798_p12 = scmp.lt.s32.totalorder %s2792_s26, %s2792_s26 }
  0x3e   :  { %v2917_v12 = vand.u32 4294901760, %v2911_v10  ;;  %v2969_v36 = vsub.f32 %v960_v21, %v973_v27  ;;  %v2971_v37 = vsub.f32 %v962_v22, %v977_v28  ;;  %v1062_v38 = vand.u32 4294901760, %v2958_v25 }
  0x3f   :  { %v129_v9 = vsub.f32 %v2899_v5, %v2903_v6  ;;  %v1074_v39 = vand.u32 4294901760, %v2960_v26  ;;  %v2983_v40 = vsub.f32 %v959_v29, %v975_v34  ;;  %v2985_v41 = vsub.f32 %v961_v30, %v979_v35  ;;  %p2799_p13 = por %p2798_p12, %p2797_p11 }
  0x40   :  { %v578_v13 = vsub.f32 %v2911_v10, %v2917_v12  ;;  %v1068_v42 = vand.u32 4294901760, %v2964_v32  ;;  %v1080_v43 = vand.u32 4294901760, %v2966_v33  ;;  %v1063_v44 = vsub.f32 %v2958_v25, %v1062_v38 }
  0x41   :  { %v2913_v11 = vand.u32 4294901760, %v129_v9  ;;  %v1075_v45 = vsub.f32 %v2960_v26, %v1074_v39  ;;  %v1086_v46 = vand.u32 4294901760, %v2969_v36  ;;  %v1098_v47 = vand.u32 4294901760, %v2971_v37  ;;  %p2800_p0 = pnand %p2799_p13, %p2793_p10 }
  0x42   :  { %v2926_v14 = vand.u32 4294901760, %v578_v13  ;;  %v2998_v48 = vpack.c.bf16 %v971_v24, %v967_v23  ;;  %v3000_v49 = vpack.c.bf16 %v977_v28, %v973_v27  ;;  %v1069_v50 = vsub.f32 %v2964_v32, %v1068_v42  ;;  %v964_v27 = vld [vmem:[#allocation7 + $0x8] sm:$0xff] }
  0x43   :  { %2551 = vmatmul.mubr.f32.vlgmr.msra.gmra.mrb[0].mxu0 %v2913_v11  ;;  %v1081_v51 = vsub.f32 %v2966_v33, %v1080_v43  ;;  %v1092_v52 = vand.u32 4294901760, %v2983_v40  ;;  %v1104_v53 = vand.u32 4294901760, %v2985_v41  ;;  %v1064_v54 = vand.u32 4294901760, %v1063_v44 }
  0x44   :  { %2554 = vmatpush3.xpose.msra.mxu0 %v2913_v11  ;;  %2555 = vmatprep.mubr.msk.f32.mxu0 %vm2828_vm0, %v2827_v0  ;;  %v1076_v55 = vand.u32 4294901760, %v1075_v45  ;;  %v1087_v56 = vsub.f32 %v2969_v36, %v1086_v46  ;;  %v1099_v57 = vsub.f32 %v2971_v37, %v1098_v47  ;;  %v3021_v58 = vpack.c.bf16 %v979_v35, %v975_v34 }
  0x45   :  { %2558 = vmatprep.subr.mxu0 %v2827_v0  ;;  %2581 = vmatmul.mubr.f32.vlgmr.msra.gmra.mrb[0].mxu1 %v2926_v14  ;;  %v1070_v59 = vand.u32 4294901760, %v1069_v50  ;;  %v1082_v60 = vand.u32 4294901760, %v1081_v51  ;;  %v1093_v61 = vsub.f32 %v2983_v40, %v1092_v52  ;;  %v1105_v62 = vsub.f32 %v2985_v41, %v1104_v53 }
  0x46   :  { %2584 = vmatpush3.xpose.msra.mxu1 %v2926_v14  ;;  %2585 = vmatprep.mubr.msk.f32.mxu1 %vm2828_vm0, %v2827_v0  ;;  %v2616_v63 = vpack.c.bf16 %v1076_v55, %v1064_v54  ;;  %v1088_v1 = vand.u32 4294901760, %v1087_v56  ;;  %v1100_v2 = vand.u32 4294901760, %v1099_v57  ;;  %v2624_v16 = vpack.c.bf16 %v2960_v26, %v2958_v25  ;;  %v963_v26 = vld [vmem:[#allocation7] sm:$0xff] }
  0x47   :  { %2588 = vmatprep.subr.mxu1 %v2827_v0  ;;  %v2618_v4 = vpack.c.bf16 %v1082_v60, %v1070_v59  ;;  %v1094_v7 = vand.u32 4294901760, %v1093_v61  ;;  %v1106_v9 = vand.u32 4294901760, %v1105_v62  ;;  %v2626_v17 = vpack.c.bf16 %v2966_v33, %v2964_v32 }
  0x48   :  { %v2620_v13 = vpack.c.bf16 %v1100_v2, %v1088_v1  ;;  %v2630_v18 = vpack.c.bf16 %v2985_v41, %v2983_v40  ;;  %v2644_v19 = vpack.c.bf16 %v1098_v47, %v1086_v46 }
  0x49   :  { %v2622_v15 = vpack.c.bf16 %v1106_v9, %v1094_v7 }
  0x4b   :  { %2556 = vmatmul.mubr.f32.vlgmr.msra.gmra.mrb[0].mxu0 %v2895_v3 }
  0x4c   :  { %2559 = vmatpush3.xpose.msra.mxu0 %v2899_v5  ;;  %2560 = vmatprep.mubr.msk.f32.mxu0 %vm2828_vm0, %v2827_v0 }
  0x4d   :  { %2563 = vmatprep.subr.mxu0 %v2827_v0  ;;  %2586 = vmatmul.mubr.f32.vlgmr.msra.gmra.mrb[0].mxu1 %v2905_v8 }
  0x4e   :  { %2589 = vmatpush3.xpose.msra.mxu1 %v2911_v10  ;;  %2590 = vmatprep.mubr.msk.f32.mxu1 %vm2828_vm0, %v2827_v0 }
  0x4f   :  { %2593 = vmatprep.subr.mxu1 %v2827_v0 }
  0x53   :  { %2561 = vmatmul.mubr.f32.vlgmr.msra.gmra.mrb[0].mxu0 %v2899_v5 }
  0x54   :  { %2564 = vmatpush3.xpose.msra.mxu0 %v2895_v3  ;;  %2565 = vmatprep.mubr.msk.f32.mxu0 %vm2828_vm0, %v2827_v0 }
  0x55   :  { %2568 = vmatprep.subr.mxu0 %v2827_v0  ;;  %2591 = vmatmul.mubr.f32.vlgmr.msra.gmra.mrb[0].mxu1 %v2911_v10 }
  0x56   :  { %2594 = vmatpush3.xpose.msra.mxu1 %v2905_v8  ;;  %2595 = vmatprep.mubr.msk.f32.mxu1 %vm2828_vm0, %v2827_v0 }
  0x57   :  { %2598 = vmatprep.subr.mxu1 %v2827_v0 }
  0x5b   :  { %2566 = vmatmul.mubr.f32.vlgmr.msra.gmra.mrb[0].mxu0 %v2903_v6 }
  0x5c   :  { %2569 = vmatpush3.xpose.msra.mxu0 %v2903_v6  ;;  %2570 = vmatprep.mubr.msk.f32.mxu0 %vm2828_vm0, %v2827_v0 }
  0x5d   :  { %2573 = vmatprep.subr.mxu0 %v2827_v0  ;;  %2596 = vmatmul.mubr.f32.vlgmr.msra.gmra.mrb[0].mxu1 %v2917_v12 }
  0x5e   :  { %2599 = vmatpush3.xpose.msra.mxu1 %v2917_v12  ;;  %2600 = vmatprep.mubr.msk.f32.mxu1 %vm2828_vm0, %v2827_v0 }
  0x5f   :  { %2603 = vmatprep.subr.mxu1 %v2827_v0 }
  0x63   :  { %2571 = vmatmul.mubr.f32.vlgmr.msra.gmra.mrb[0].mxu0 %v2895_v3 }
  0x64   :  { %2574 = vmatpush3.xpose.msra.mxu0 %v2895_v3  ;;  %2575 = vmatprep.mubr.msk.f32.mxu0 %vm2828_vm0, %v2827_v0 }
  0x65   :  { %2609 = vmatprep.subr.bf16.mxu0 %v2962_v31  ;;  %2601 = vmatmul.mubr.f32.vlgmr.msra.gmra.mrb[0].mxu1 %v2905_v8 }
  0x66   :  { %2604 = vmatpush3.xpose.msra.mxu1 %v2905_v8  ;;  %2605 = vmatprep.mubr.msk.f32.mxu1 %vm2828_vm0, %v2827_v0 }
  0x6b   :  { %2576 = vmatmul.mubr.f32.vlgmr.msra.gmra.mrb[0].mxu0 %v2895_v3 }
  0x6c   :  { %2611 = vmatpush1.bf16.msra.mxu0 %v2998_v48  ;;  %1037 = vmatprep.mubr.f32.mxu0 %v2827_v0 }
  0x6d   :  { %2613 = vmatprep.subr.bf16.mxu0 %v3000_v49  ;;  %2606 = vmatmul.mubr.f32.vlgmr.msra.gmra.mrb[0].mxu1 %v2905_v8 }
  0x6e   :  { %1631 = vmatprep.mubr.f32.mxu1 %v2827_v0 }
  0x70   :  { %2615 = vmatpush1.bf16.msra.mxu0 %v3021_v58 }
  0x71   :  { %2617 = vmatprep.subr.bf16.mxu0 %v2616_v63 }
  0x73   :  { %1043 = vmatmul.mubr.f32.vlgmr.msra.gmra.mrb[2].mxu0 %v2913_v11  ;;  %v2628_v11 = vpack.c.bf16 %v2971_v37, %v2969_v36 }
  0x74   :  { %2619 = vmatpush1.bf16.msra.mxu0 %v2618_v4  ;;  %1048 = vmatprep.mubr.f32.mxu0 %v2827_v0 }
  0x75   :  { %2621 = vmatprep.subr.bf16.mxu0 %v2620_v13 }
  0x77   :  { %1054 = vmatmul.mubr.f32.gmra.mrb[4].mxu0 %v2926_v14  ;;  %v2640_v14 = vpack.c.bf16 %v1074_v39, %v1062_v38 }
  0x78   :  { %2623 = vmatpush1.bf16.msra.mxu0 %v2622_v15  ;;  %1164 = vmatprep.mubr.f32.mxu0 %v2827_v0 }
  0x79   :  { %2625 = vmatprep.subr.bf16.mxu0 %v2624_v16 }
  0x7b   :  { %1166 = vmatmul.mubr.f32.vlgmr.msra.gmra.mrb[2].mxu0 %v2895_v3 }
  0x7c   :  { %2627 = vmatpush1.bf16.msra.mxu0 %v2626_v17  ;;  %1171 = vmatprep.mubr.f32.mxu0 %v2827_v0 }
  0x7d   :  { %2629 = vmatprep.subr.bf16.mxu0 %v2628_v11 }
  0x7f   :  { %1173 = vmatmul.mubr.f32.gmra.mrb[4].mxu0 %v2905_v8 }
  0x80   :  { %2631 = vmatpush1.bf16.msra.mxu0 %v2630_v18  ;;  %1259 = vmatprep.mubr.f32.mxu0 %v2827_v0 }
  0x81   :  { %2633 = vmatprep.subr.bf16.mxu0 %v2962_v31 }
  0x83   :  { %1262 = vmatmul.mubr.f32.vlgmr.msra.gmra.mrb[2].mxu0 %v2899_v5  ;;  %v2642_v5 = vpack.c.bf16 %v1080_v43, %v1068_v42 }
  0x84   :  { %2635 = vmatpush1.bf16.msra.mxu0 %v2998_v48  ;;  %1267 = vmatprep.mubr.f32.mxu0 %v2827_v0 }
  0x85   :  { %2637 = vmatprep.subr.bf16.mxu0 %v3000_v49 }
  0x87   :  { %1270 = vmatmul.mubr.f32.gmra.mrb[4].mxu0 %v2911_v10  ;;  %v2646_v10 = vpack.c.bf16 %v1104_v53, %v1092_v52 }
  0x88   :  { %2639 = vmatpush1.bf16.msra.mxu0 %v3021_v58  ;;  %1348 = vmatprep.mubr.f32.mxu0 %v2827_v0 }
  0x89   :  { %2641 = vmatprep.subr.bf16.mxu0 %v2640_v14 }
  0x8b   :  { %1352 = vmatmul.mubr.f32.vlgmr.msra.gmra.mrb[2].mxu0 %v2903_v6 }
  0x8c   :  { %2643 = vmatpush1.bf16.msra.mxu0 %v2642_v5  ;;  %1357 = vmatprep.mubr.f32.mxu0 %v2827_v0 }
  0x8d   :  { %2645 = vmatprep.subr.bf16.mxu0 %v2644_v19 }
  0x8f   :  { %1361 = vmatmul.mubr.f32.gmra.mrb[4].mxu0 %v2917_v12 }
  0x90   :  { %2647 = vmatpush1.bf16.msra.mxu0 %v2646_v10  ;;  %1455 = vmatprep.mubr.f32.mxu0 %v2827_v0 }
  0x91   :  { %2649 = vmatprep.subr.bf16.mxu0 %v2962_v31 }
  0x93   :  { %1457 = vmatmul.mubr.f32.vlgmr.msra.gmra.mrb[2].mxu0 %v2895_v3 }
  0x94   :  { %2651 = vmatpush1.bf16.msra.mxu0 %v2998_v48  ;;  %1462 = vmatprep.mubr.f32.mxu0 %v2827_v0 }
  0x95   :  { %2653 = vmatprep.subr.bf16.mxu0 %v3000_v49 }
  0x97   :  { %1464 = vmatmul.mubr.f32.gmra.mrb[4].mxu0 %v2905_v8 }
  0x98   :  { %2655 = vmatpush1.bf16.msra.mxu0 %v3021_v58  ;;  %1542 = vmatprep.mubr.f32.mxu0 %v2827_v0 }
  0x9b   :  { %1544 = vmatmul.mubr.f32.vlgmr.msra.gmra.mrb[2].mxu0 %v2895_v3 }
  0x9c   :  { %1549 = vmatprep.mubr.f32.mxu0 %v2827_v0 }
  0x9f   :  { %1551 = vmatmul.mubr.f32.gmra.mrb[4].mxu0 %v2905_v8 }
 0x13e   :  { %v502_v6 = vpop.f32.mrb[0].mxu0 }
 0x13f   :  { %v2577_v12 = vpop.f32.mrb[1].mxu0  ;;  %v1563_v22 = vsel %vm1561_vm2, %v502_v6, 0 }
 0x140   :  { %v951_v20 = vpop.f32.mrb[0].mxu1  ;;  %v1632_v23 = vand.u32 4294901760, %v1563_v22 }
 0x141   :  { %v2607_v21 = vpop.f32.mrb[1].mxu1  ;;  %v2031_v45 = vsel %vm1561_vm2, %v951_v20, 0 }
 0x142   :  { %v1633_v24 = vsub.f32 %v1563_v22, %v1632_v23  ;;  %v2100_v48 = vand.u32 4294901760, %v2031_v45 }
 0x144   :  { %v1634_v25 = vand.u32 4294901760, %v1633_v24  ;;  %v2101_v51 = vsub.f32 %v2031_v45, %v2100_v48 }
 0x146   :  { %v1635_v30 = vsub.f32 %v1633_v24, %v1634_v25  ;;  %v2102_v54 = vand.u32 4294901760, %v2101_v51 }
 0x148   :  { %v1636_v36 = vand.u32 4294901760, %v1635_v30  ;;  %v2103_v57 = vsub.f32 %v2101_v51, %v2102_v54 }
 0x14a   :  { %v2104_v60 = vand.u32 4294901760, %v2103_v57 }
 0x16e   :  { %v3091_v28 = vpop.f32.mrb[2].mxu0 }
 0x16f   :  { %v1557_v3 = vmul.f32 %v3091_v28, %v963_v26  ;;  %v3094_v29 = vpop.f32.mrb[3].mxu0 }
 0x170   :  { %v1558_v8 = vmul.f32 %v3094_v29, %v964_v27 }
 0x171   :  { %v1567_v31 = vand.u32 4294901760, %v1557_v3 }
 0x172   :  { %v3097_v32 = vpop.f32.mrb[4].mxu0  ;;  %v1565_v33 = vand.u32 4294901760, %v1558_v8 }
 0x173   :  { %v1650_v34 = vsub.f32 %v1557_v3, %v1567_v31  ;;  %v3099_v35 = vpop.f32.mrb[5].mxu0  ;;  %v1559_v46 = vmul.f32 %v3097_v32, %v963_v26 }
 0x174   :  { %v1644_v37 = vsub.f32 %v1558_v8, %v1565_v33  ;;  %1566 = vmatprep.subr.mxu1 %v1565_v33  ;;  %v1560_v44 = vmul.f32 %v3099_v35, %v964_v27 }
 0x175   :  { %v1651_v38 = vand.u32 4294901760, %v1650_v34  ;;  %1568 = vmatpush1.msra.mxu1 %v1567_v31  ;;  %v2035_v49 = vand.u32 4294901760, %v1559_v46 }
 0x176   :  { %1637 = vmatmul.mubr.f32.vlgmr.msra.gmra.mrb[2].mxu1 %v1636_v36  ;;  %v1645_v39 = vand.u32 4294901760, %v1644_v37  ;;  %v2033_v47 = vand.u32 4294901760, %v1560_v44 }
 0x177   :  { %v1652_v40 = vsub.f32 %v1650_v34, %v1651_v38  ;;  %1717 = vmatprep.mubr.f32.mxu1 %v2827_v0  ;;  %v2118_v52 = vsub.f32 %v1559_v46, %v2035_v49 }
 0x178   :  { %v1646_v41 = vsub.f32 %v1644_v37, %v1645_v39  ;;  %v2112_v50 = vsub.f32 %v1560_v44, %v2033_v47 }
 0x179   :  { %v1653_v43 = vand.u32 4294901760, %v1652_v40  ;;  %v2119_v55 = vand.u32 4294901760, %v2118_v52 }
 0x17a   :  { %v1647_v42 = vand.u32 4294901760, %v1646_v41  ;;  %v2113_v53 = vand.u32 4294901760, %v2112_v50 }
 0x17b   :  { %v2120_v58 = vsub.f32 %v2118_v52, %v2119_v55 }
 0x17c   :  { %1648 = vmatprep.subr.mxu1 %v1647_v42  ;;  %v2114_v56 = vsub.f32 %v2112_v50, %v2113_v53 }
 0x17d   :  { %1654 = vmatpush1.msra.mxu1 %v1653_v43  ;;  %v2121_v61 = vand.u32 4294901760, %v2120_v58 }
 0x17e   :  { %1719 = vmatmul.mubr.f32.vlgmr.msra.gmra.mrb[2].mxu1 %v1632_v23  ;;  %1727 = vmatprep.subr.mxu1 %v1644_v37  ;;  %v2115_v59 = vand.u32 4294901760, %v2114_v56 }
 0x17f   :  { %1730 = vmatpush1.msra.mxu1 %v1650_v34  ;;  %1793 = vmatprep.mubr.f32.mxu1 %v2827_v0 }
 0x180   :  { %1803 = vmatprep.subr.mxu1 %v1565_v33 }
 0x186   :  { %1796 = vmatmul.mubr.f32.vlgmr.msra.gmra.mrb[2].mxu1 %v1633_v24 }
 0x187   :  { %1805 = vmatpush1.msra.mxu1 %v1567_v31  ;;  %1868 = vmatprep.mubr.f32.mxu1 %v2827_v0 }
 0x188   :  { %1881 = vmatprep.subr.mxu1 %v1645_v39 }
 0x18e   :  { %1872 = vmatmul.mubr.f32.vlgmr.msra.gmra.mrb[2].mxu1 %v1634_v25 }
 0x18f   :  { %1885 = vmatpush1.msra.mxu1 %v1651_v38  ;;  %1948 = vmatprep.mubr.f32.mxu1 %v2827_v0 }
 0x190   :  { %1957 = vmatprep.subr.mxu1 %v1565_v33 }
 0x196   :  { %1950 = vmatmul.mubr.f32.vlgmr.msra.gmra.mrb[2].mxu1 %v1632_v23 }
 0x197   :  { %1959 = vmatpush1.msra.mxu1 %v1567_v31  ;;  %2022 = vmatprep.mubr.f32.mxu1 %v2827_v0 }
 0x198   :  { %2034 = vmatprep.subr.mxu1 %v2033_v47 }
 0x19e   :  { %2024 = vmatmul.mubr.f32.vlgmr.msra.gmra.mrb[2].mxu1 %v1632_v23 }
 0x19f   :  { %2036 = vmatpush1.msra.mxu1 %v2035_v49  ;;  %2099 = vmatprep.mubr.f32.mxu1 %v2827_v0 }
 0x1a0   :  { %2116 = vmatprep.subr.mxu1 %v2115_v59 }
 0x1a2   :  { %2105 = vmatmul.mubr.f32.vlgmr.msra.gmra.mrb[4].mxu1 %v2104_v60 }
 0x1a3   :  { %2122 = vmatpush1.msra.mxu1 %v2121_v61  ;;  %2185 = vmatprep.mubr.f32.mxu1 %v2827_v0 }
 0x1a4   :  { %2195 = vmatprep.subr.mxu1 %v2112_v50 }
 0x1aa   :  { %2187 = vmatmul.mubr.f32.vlgmr.msra.gmra.mrb[4].mxu1 %v2100_v48 }
 0x1ab   :  { %2198 = vmatpush1.msra.mxu1 %v2118_v52  ;;  %2261 = vmatprep.mubr.f32.mxu1 %v2827_v0 }
 0x1ac   :  { %2271 = vmatprep.subr.mxu1 %v2033_v47 }
 0x1b2   :  { %2264 = vmatmul.mubr.f32.vlgmr.msra.gmra.mrb[4].mxu1 %v2101_v51 }
 0x1b3   :  { %2273 = vmatpush1.msra.mxu1 %v2035_v49  ;;  %2336 = vmatprep.mubr.f32.mxu1 %v2827_v0 }
 0x1b4   :  { %2349 = vmatprep.subr.mxu1 %v2113_v53 }
 0x1ba   :  { %2340 = vmatmul.mubr.f32.vlgmr.msra.gmra.mrb[4].mxu1 %v2102_v54 }
 0x1bb   :  { %2353 = vmatpush1.msra.mxu1 %v2119_v55  ;;  %2416 = vmatprep.mubr.f32.mxu1 %v2827_v0 }
 0x1bc   :  { %2425 = vmatprep.subr.mxu1 %v2033_v47 }
 0x1c2   :  { %2418 = vmatmul.mubr.f32.vlgmr.msra.gmra.mrb[4].mxu1 %v2100_v48 }
 0x1c3   :  { %2427 = vmatpush1.msra.mxu1 %v2035_v49  ;;  %2490 = vmatprep.mubr.f32.mxu1 %v2827_v0 }
 0x1ca   :  { %2492 = vmatmul.mubr.f32.vlgmr.msra.gmra.mrb[4].mxu1 %v2100_v48 }
 0x271   :  { %v2025_v62 = vpop.f32.mrb[2].mxu1 }
 0x272   :  { %v2498_v63 = vmul.f32 %v2025_v62, %v3091_v28  ;;  %v2027_v1 = vpop.f32.mrb[3].mxu1 }
 0x273   :  { %v2499_v2 = vmul.f32 %v2027_v1, %v3094_v29 }
 0x274   :  { %2502 = vst [vmem:[#allocation8] sm:$0xff] %v2498_v63 }
 0x275   :  { %2503 = vst [vmem:[#allocation8 + $0x8] sm:$0xff] %v2499_v2 }
 0x29d   :  { %v2493_v4 = vpop.f32.mrb[4].mxu1 }
 0x29e   :  { %v2500_v7 = vmul.f32 %v2493_v4, %v3097_v32  ;;  %v2495_v9 = vpop.f32.mrb[5].mxu1 }
 0x29f   :  { %v2501_v13 = vmul.f32 %v2495_v9, %v3099_v35 }
 0x2a0   :  { %2504 = vst [vmem:[#allocation8 + $0x10] sm:$0xff] %v2500_v7 }
 0x2a1   :  { %2505 = vst [vmem:[#allocation8 + $0x18] sm:$0xff] %v2501_v13 }
 0x2a2   :  { %2803 = shalt.err (!%p2800_p0)
}
 0x2a3   :  { %s2804_s29 = scalar_lea.hbm %s3137_s3, 512 }
 0x2a4   :  { %p2805_p1 = scmp.ne.s32.totalorder %s3137_s3, %s2804_s29  ;;  %p2808_p2 = scmp.lt.u32.totalorder %s2804_s29, %s3137_s3 }
 0x2a6   :  { %p2810_p3 = pnand %p2808_p2, %p2805_p1 }
 0x2a8   :  { %2813 = shalt.err (!%p2810_p3)
}
 0x2a9   :  { %2517 = dma.vmem_to_hbm [thread:$0]  %s2512_s25, 512, %s3137_s3, [#allocation4], %s2821_s22, %s2821_s22, %s2822_s23  }
 0x2aa   :  { %2818 = dma.done.wait [#allocation4], 512  }
 0x2ab   :  { %2819 = vsyncadd [#allocation4], 4294966784 }
 0x2ac   :  { %2521 = vsyncpa [#allocation3], 1 }
 0x2ad   :  { %2522 = vsyncpa [#allocation6], 1 }
 0x2ae   :  { %2523 = vsyncpa [#allocation4], 1 }

</bundles_post_ra>
